<compile_context>
chip_gen: v6e
topology: v6e:2x2x1
jax: 0.10.0
libtpu: 0.0.40
codegen_flags: <defaults>
</compile_context>

<pallas_src>
import inspect

import jax
import jax.numpy as jnp
from jax.experimental import pallas as pl
from jax.experimental.pallas import tpu as pltpu


def _round_up(x: int, m: int) -> int:
    return ((x + m - 1) // m) * m


def _supports_pipeline_mode() -> bool:
    try:
        return hasattr(pl, "Buffered") and (
            "pipeline_mode" in inspect.signature(pl.BlockSpec).parameters)
    except (TypeError, ValueError):
        return False


def ppo_actor_kernel(obs_ref, w1_ref, b1_ref, w2_ref, b2m_ref, out_ref):
    # fc1 + ReLU.  obs arrives in its native dtype; casting a (tb, obs_dim) tile to bf16
    # is negligible VPU work (obs_dim is tiny), and there is no wrapper-side copy at all.
    x = obs_ref[...].astype(jnp.bfloat16)
    h = jnp.dot(x, w1_ref[...], preferred_element_type=jnp.float32)
    h = jnp.maximum(h + b1_ref[...], 0.0)

    # fc2.  b2m carries b2 in the real action columns and -1e30 in the padded ones, so
    # padded logits vanish under the max-subtracted softmax (exp underflows to 0).
    logits = jnp.dot(h.astype(jnp.bfloat16), w2_ref[...],
                     preferred_element_type=jnp.float32)
    logits = logits + b2m_ref[...]

    # Numerically stable softmax over the 128 padded action lanes, f32 epilogue.
    # Exact divide (not approx reciprocal) so each row sums to 1 to f32 precision.
    m = jnp.max(logits, axis=-1, keepdims=True)
    e = jnp.exp(logits - m)
    denom = jnp.sum(e, axis=-1, keepdims=True)
    out_ref[...] = (e / denom).astype(out_ref.dtype)


def prepare_actor_params(w1, b1, w2, b2):
    """Pack PolicyNet weights into lane-padded matrices + bias rows.

    w1: [obs_dim, hidden], b1: [hidden], w2: [hidden, act_dim], b2: [act_dim]
    (weights stored as [in, out], i.e. the transpose of torch nn.Linear.weight).
    Returns (w1_p bf16 [obs_dim, h_pad], b1_p f32 [1, h_pad],
             w2_p bf16 [h_pad, a_pad],  b2m f32 [1, a_pad]).
    """
    obs_dim, hidden = w1.shape
    act_dim = w2.shape[1]
    h_pad = _round_up(hidden, 128)
    a_pad = _round_up(act_dim, 128)

    w1_p = jnp.zeros((obs_dim, h_pad), jnp.float32)
    w1_p = w1_p.at[:, :hidden].set(w1).astype(jnp.bfloat16)
    b1_p = jnp.zeros((1, h_pad), jnp.float32).at[0, :hidden].set(jnp.reshape(b1, (-1,)))

    w2_p = jnp.zeros((h_pad, a_pad), jnp.float32)
    w2_p = w2_p.at[:hidden, :act_dim].set(w2).astype(jnp.bfloat16)
    # Bias row also masks the padded action columns with a huge negative logit.
    b2m = jnp.full((1, a_pad), -1e30, jnp.float32).at[0, :act_dim].set(
        jnp.reshape(b2, (-1,)))

    return w1_p, b1_p, w2_p, b2m


def ppo_forward(obs, w1_p, b1_p, w2_p, b2m, tb=None):
    """PPO.forward(obs) == actor(obs).

    Returns the padded bf16 probability slab [B, a_pad]; real action probabilities are
    the first act_dim columns (padded columns are exactly 0).  Slicing is left to the
    consumer so the kernel's lane-dense writeback is the only HBM pass over the output.
    """
    B, obs_dim = obs.shape
    assert w1_p.shape[0] == obs_dim and w1_p.shape[1] == w2_p.shape[0]
    h_pad = w1_p.shape[1]
    a_pad = w2_p.shape[1]

    # Default tile: split the batch in (at least) two so v7x's two TensorCores both get
    # a block; cap at 4096 rows so large batches still stream (VMEM use stays tiny on
    # every generation).  Always a multiple of 8 sublanes, never larger than the batch.
    if tb is None:
        tb = min(4096, max(8, _round_up((B + 1) // 2, 8)))
    tb = min(_round_up(tb, 8), _round_up(B, 8))
    num_steps = pl.cdiv(B, tb)
    grid = (num_steps,)

    # Deeper pipelining only pays off for long grids of tiny steps; enable it only then,
    # and only if this Pallas version supports pipeline_mode (feature-checked).
    deep = num_steps >= 4 and _supports_pipeline_mode()

    def spec(shape, index_map, buffers=None):
        if deep and buffers is not None:
            return pl.BlockSpec(shape, index_map, pipeline_mode=pl.Buffered(buffers))
        return pl.BlockSpec(shape, index_map)

    cost = pl.CostEstimate(
        flops=2 * B * (obs_dim * h_pad + h_pad * a_pad),
        transcendentals=B * a_pad,                      # exp
        bytes_accessed=(B * obs_dim * obs.dtype.itemsize   # obs read (no wrapper copy)
                        + obs_dim * h_pad * 2 + h_pad * 4  # w1 + b1
                        + h_pad * a_pad * 2 + a_pad * 4    # w2 + b2/mask
                        + B * a_pad * 2),                  # bf16 output slab
    )

    probs_pad = pl.pallas_call(
        ppo_actor_kernel,
        out_shape=jax.ShapeDtypeStruct((B, a_pad), jnp.bfloat16),
        grid=grid,
        in_specs=[
            spec((tb, obs_dim), lambda i: (i, 0), buffers=3),    # obs: streamed
            spec((obs_dim, h_pad), lambda i: (0, 0), buffers=1),  # w1: VMEM-resident
            spec((1, h_pad), lambda i: (0, 0), buffers=1),        # b1: VMEM-resident
            spec((h_pad, a_pad), lambda i: (0, 0), buffers=1),    # w2: VMEM-resident
            spec((1, a_pad), lambda i: (0, 0), buffers=1),        # b2 + pad mask
        ],
        out_specs=spec((tb, a_pad), lambda i: (i, 0), buffers=3),  # lane-dense bf16 slab
        compiler_params=pltpu.CompilerParams(
            dimension_semantics=("parallel",)),                    # megacore split (v7x)
        cost_estimate=cost,
    )(obs, w1_p, b1_p, w2_p, b2m)

    return probs_pad


if __name__ == "__main__":
    # Small RL-style shapes consistent with PolicyNet: obs_dim=8, hidden=32, 4 actions.
    # Batch 256 with the default tile (ceil(B/2)=128) exercises a 2-step batch grid.
    B, OBS_DIM, ACT_DIM, HIDDEN = 256, 8, 4, 32

    key = jax.random.PRNGKey(0)
    k_obs, k1, k2, k3, k4 = jax.random.split(key, 5)
    obs = jax.random.normal(k_obs, (B, OBS_DIM), jnp.float32)
    w1 = jax.random.normal(k1, (OBS_DIM, HIDDEN), jnp.float32) * 0.1
    b1 = jax.random.normal(k2, (HIDDEN,), jnp.float32) * 0.1
    w2 = jax.random.normal(k3, (HIDDEN, ACT_DIM), jnp.float32) * 0.1
    b2 = jax.random.normal(k4, (ACT_DIM,), jnp.float32) * 0.1

    params = prepare_actor_params(w1, b1, w2, b2)
    probs_pad = ppo_forward(obs, *params)          # default tb -> 128, grid=(2,)
    jax.block_until_ready(probs_pad)

    # Consumer-side slice of the real action columns (test is the consumer here).
    probs = probs_pad[:, :ACT_DIM].astype(jnp.float32)

    # Pure-JAX f32 reference of the same forward pass (kernel uses bf16 matmuls and a
    # bf16 output slab, hence the relaxed tolerances).
    h_ref = jnp.maximum(obs @ w1 + b1, 0.0)
    ref = jax.nn.softmax(h_ref @ w2 + b2, axis=-1)

    assert probs_pad.shape == (B, 128) and probs_pad.dtype == jnp.bfloat16
    assert jnp.allclose(probs, ref, atol=2e-2, rtol=2e-2), float(jnp.max(jnp.abs(probs - ref)))
    assert jnp.allclose(jnp.sum(probs, axis=-1), 1.0, atol=1e-2)
    assert bool(jnp.all(probs >= 0.0))
    # Padded action columns must carry (numerically) zero probability.
    assert float(jnp.max(probs_pad[:, ACT_DIM:].astype(jnp.float32))) <= 1e-6

    print("KERNEL_OK")
</pallas_src>

<mosaic_0001>
module attributes {stable_mosaic.version = 11 : i64} {
  func.func @ppo_actor_kernel(%arg0: i32, %arg1: memref<128x8xf32, #tpu.memory_space<vmem>>, %arg2: memref<8x128xbf16, #tpu.memory_space<vmem>>, %arg3: memref<1x128xf32, #tpu.memory_space<vmem>>, %arg4: memref<128x128xbf16, #tpu.memory_space<vmem>>, %arg5: memref<1x128xf32, #tpu.memory_space<vmem>>, %arg6: memref<128x128xbf16, #tpu.memory_space<vmem>>) attributes {dimension_semantics = [#tpu.dimension_semantics<parallel>], iteration_bounds = array<i64: 2>, scalar_prefetch = 0 : i64, scratch_operands = 0 : i64, tpu.core_type = #tpu.core_type<tc>, window_params = [{transform_indices = @transform_0, window_bounds = array<i64: 128, 8>}, {pipeline_mode = #tpu.pipeline_mode<synchronous>, transform_indices = @transform_1, window_bounds = array<i64: 8, 128>}, {pipeline_mode = #tpu.pipeline_mode<synchronous>, transform_indices = @transform_2, window_bounds = array<i64: 1, 128>}, {pipeline_mode = #tpu.pipeline_mode<synchronous>, transform_indices = @transform_3, window_bounds = array<i64: 128, 128>}, {pipeline_mode = #tpu.pipeline_mode<synchronous>, transform_indices = @transform_4, window_bounds = array<i64: 1, 128>}, {transform_indices = @transform_5, window_bounds = array<i64: 128, 128>}]} {
    %c0 = arith.constant 0 : index
    %c0_0 = arith.constant 0 : index
    %0 = vector.load %arg1[%c0, %c0_0] : memref<128x8xf32, #tpu.memory_space<vmem>>, vector<128x8xf32>
    %1 = arith.truncf %0 : vector<128x8xf32> to vector<128x8xbf16>
    %c0_1 = arith.constant 0 : index
    %c0_2 = arith.constant 0 : index
    %2 = vector.load %arg2[%c0_1, %c0_2] : memref<8x128xbf16, #tpu.memory_space<vmem>>, vector<8x128xbf16>
    %cst = arith.constant dense<0.000000e+00> : vector<128x128xf32>
    %3 = tpu.matmul %1, %2, %cst {dimension_numbers = #tpu.dot_dimension_numbers<[1], [0], [0], [1], [0, 0, 1, 1], [], []>} : vector<128x8xbf16>, vector<8x128xbf16>, vector<128x128xf32> -> vector<128x128xf32>
    %c0_3 = arith.constant 0 : index
    %c0_4 = arith.constant 0 : index
    %4 = vector.load %arg3[%c0_3, %c0_4] : memref<1x128xf32, #tpu.memory_space<vmem>>, vector<1x128xf32>
    %5 = vector.broadcast %4 : vector<1x128xf32> to vector<128x128xf32>
    %6 = arith.addf %3, %5 : vector<128x128xf32>
    %cst_5 = arith.constant 0.000000e+00 : f32
    %7 = vector.broadcast %cst_5 : f32 to vector<128x128xf32>
    %8 = arith.maximumf %6, %7 : vector<128x128xf32>
    %9 = arith.truncf %8 : vector<128x128xf32> to vector<128x128xbf16>
    %c0_6 = arith.constant 0 : index
    %c0_7 = arith.constant 0 : index
    %10 = vector.load %arg4[%c0_6, %c0_7] : memref<128x128xbf16, #tpu.memory_space<vmem>>, vector<128x128xbf16>
    %cst_8 = arith.constant dense<0.000000e+00> : vector<128x128xf32>
    %11 = tpu.matmul %9, %10, %cst_8 {dimension_numbers = #tpu.dot_dimension_numbers<[1], [0], [0], [1], [0, 0, 1, 1], [], []>} : vector<128x128xbf16>, vector<128x128xbf16>, vector<128x128xf32> -> vector<128x128xf32>
    %c0_9 = arith.constant 0 : index
    %c0_10 = arith.constant 0 : index
    %12 = vector.load %arg5[%c0_9, %c0_10] : memref<1x128xf32, #tpu.memory_space<vmem>>, vector<1x128xf32>
    %13 = vector.broadcast %12 : vector<1x128xf32> to vector<128x128xf32>
    %14 = arith.addf %11, %13 : vector<128x128xf32>
    %cst_11 = arith.constant dense<0xFF800000> : vector<128xf32>
    %15 = vector.multi_reduction <maximumf>, %14, %cst_11 [1] : vector<128x128xf32> to vector<128xf32>
    %16 = vector.shape_cast %15 : vector<128xf32> to vector<128x1xf32>
    %17 = vector.broadcast %16 : vector<128x1xf32> to vector<128x128xf32>
    %18 = arith.subf %14, %17 : vector<128x128xf32>
    %19 = math.exp %18 : vector<128x128xf32>
    %cst_12 = arith.constant dense<0.000000e+00> : vector<128xf32>
    %20 = vector.multi_reduction <add>, %19, %cst_12 [1] : vector<128x128xf32> to vector<128xf32>
    %21 = vector.shape_cast %20 : vector<128xf32> to vector<128x1xf32>
    %22 = vector.broadcast %21 : vector<128x1xf32> to vector<128x128xf32>
    %23 = arith.divf %19, %22 : vector<128x128xf32>
    %24 = arith.truncf %23 : vector<128x128xf32> to vector<128x128xbf16>
    %c0_13 = arith.constant 0 : index
    %c0_14 = arith.constant 0 : index
    %25 = vector.load %arg6[%c0_13, %c0_14] : memref<128x128xbf16, #tpu.memory_space<vmem>>, vector<128x128xbf16>
    tpu.vector_store %arg6[%c0_13, %c0_14], %24 {strides = array<i32>} : memref<128x128xbf16, #tpu.memory_space<vmem>>, vector<128x128xbf16>,
    return
  }
  func.func @transform_0(%arg0: i32) -> (i32, i32) {
    %c0_i32 = arith.constant 0 : i32
    %c0_i32_0 = arith.constant 0 : i32
    return %arg0, %c0_i32 : i32, i32
  }
  func.func @transform_1(%arg0: i32) -> (i32, i32) {
    %c0_i32 = arith.constant 0 : i32
    %c0_i32_0 = arith.constant 0 : i32
    %c0_i32_1 = arith.constant 0 : i32
    return %c0_i32, %c0_i32_0 : i32, i32
  }
  func.func @transform_2(%arg0: i32) -> (i32, i32) {
    %c0_i32 = arith.constant 0 : i32
    %c0_i32_0 = arith.constant 0 : i32
    %c0_i32_1 = arith.constant 0 : i32
    return %c0_i32, %c0_i32_0 : i32, i32
  }
  func.func @transform_3(%arg0: i32) -> (i32, i32) {
    %c0_i32 = arith.constant 0 : i32
    %c0_i32_0 = arith.constant 0 : i32
    %c0_i32_1 = arith.constant 0 : i32
    return %c0_i32, %c0_i32_0 : i32, i32
  }
  func.func @transform_4(%arg0: i32) -> (i32, i32) {
    %c0_i32 = arith.constant 0 : i32
    %c0_i32_0 = arith.constant 0 : i32
    %c0_i32_1 = arith.constant 0 : i32
    return %c0_i32, %c0_i32_0 : i32, i32
  }
  func.func @transform_5(%arg0: i32) -> (i32, i32) {
    %c0_i32 = arith.constant 0 : i32
    %c0_i32_0 = arith.constant 0 : i32
    return %arg0, %c0_i32 : i32, i32
  }
}

</mosaic_0001>

<bundles_post_ra>
// kernel: tpu_custom_call.1
= control target key start
LH: loop header
LB: loop body
LE: loop exit
PB: predicated region body
PF: predicated region fallthrough
CT: control target
= control target key end

     0   :  { %10 = vsyncpa [#allocation3], 0  ;;  %s1554_s0 = inlined_call_operand.vmem [shape: f32[256,8], index: 0, kind: input, shape index: {}]   ;;  %s1555_s1 = inlined_call_operand.vmem [shape: bf16[8,128], index: 1, kind: input, shape index: {}]   ;;  %s1556_s2 = inlined_call_operand.vmem [shape: f32[1,128], index: 2, kind: input, shape index: {}]   ;;  %s1557_s3 = inlined_call_operand.vmem [shape: bf16[128,128], index: 3, kind: input, shape index: {}]   ;;  %s1558_s4 = inlined_call_operand.vmem [shape: f32[1,128], index: 4, kind: input, shape index: {}]   ;;  %s1559_s5 = inlined_call_operand.hbm [shape: bf16[256,128], index: 5, kind: output, shape index: {}]  }
   0x1   :  { %12 = vsyncpa [#allocation3 + $0x1], 0  ;;  %s1287_s18 = smov 0   ;;  %s1289_s19 = smov 0  }
   0x2   :  { %s1291_s20 = smov 0   ;;  %s1293_s21 = smov 0  }
   0x3 LB: > { %s1308_s22 = sadd.s32 4294967295, %s1252_s21   ;;  %s877_s23 = sadd.s32 4294967294, %s1252_s21   ;;  %s1252_s21 = sphi %s1293_s21, %s1565_s21   ;;  %s1248_s20 = sphi %s1291_s20, %s1564_s20   ;;  %s1244_s19 = sphi %s1289_s19, %s1563_s19   ;;  %s1240_s18 = sphi %s1287_s18, %s1562_s18  }
   0x4   : > { %s1312_s24 = sadd.s32 1, %s1252_s21   ;;  %s135_s25 = sadd.s32 1, %s1248_s20 }
   0x5   : > { %s132_s26 = ssub.s32 %s1252_s21, %s1312_s24  ;;  %p145_p0 = scmp.ne.s32.totalorder %s1248_s20, %s1244_s19 }
   0x6   : > { %p133_p1 = scmp.eq.s32.totalorder %s132_s26, 0  ;;  %p146_p2 = scmp.eq.s32.totalorder %s1308_s22, 1 }
   0x7   : > { %p151_p3 = scmp.ne.s32.totalorder %s1244_s19, %s1240_s18  ;;  %p152_p4 = scmp.eq.s32.totalorder %s877_s23, 1 }
   0x8   : > { %s1323_s27 = scalar_select %p133_p1, %s1248_s20, %s135_s25  }
   0x9   : > { %p1325_p5 = por %p146_p2, %p145_p0  ;;  %p1329_p6 = por %p152_p4, %p151_p3 }
   0xa   : > { %p880_p7 = scmp.ge.s32.totalorder %s1252_s21, 1  ;;  %p191_p8 = scmp.lt.s32.totalorder %s1252_s21, 3 }
   0xc   : > { %p192_p9 = pnand %p880_p7, %p191_p8 }
   0xd   : > { %s882_s7 = sshll.u32 (!%p192_p9), %s1308_s22, 4  ;;  %s216_s16 = sand.u32 (!%p192_p9), 1, %s1244_s19  }
   0xe   : > { %195 = sbr.rel (%p192_p9) target bundleno = 787 (0x313), region = 40  ;;  %p220_p10 = scmp.lt.s32.totalorder (!%p192_p9), %s882_s7, 31 }
   0xf   : > { %s939_s25 = sshll.u32 (!%p192_p9), %s1308_s22, 10  ;;  %s1514_s22 = scalar_lea.sflag (!%p192_p9), [#allocation3], %s216_s16 }
  0x10   : > { %s1254_s9 = smov (!%p192_p9), [#allocation2]  }
  0x11   : > { %s1196_s10 = sshll.u32 (!%p192_p9), %s1254_s9, 4  ;;  %s1197_s10 = int_to_ptr.vmem [resolvable:$false] %s1196_s10 }
  0x12   : > { %s1198_s11 = scalar_lea.vmem (!%p192_p9), %s1197_s10, 2048 }
  0x13   : > { %v251_v0 = vld [vmem:[%s1555_s1] sm:$0xf]  ;;  %vm284_vm0 = vcmask 1043456   ;;  %v1120_v1 = vld [vmem:[%s1557_s3 + $0x38] sm:$0xff]   ;;  %v1121_v3 = vld [vmem:[%s1557_s3 + $0x30] sm:$0xff]   ;;  %s1567_s7 = smov (!%p220_p10, %s882_s7), 31 }
  0x14   : > { %1078 = vmatprep.subr.msk.bf16.mxu0 %vm284_vm0, %v251_v0  ;;  %v286_v2 = vsel %vm284_vm0, %v251_v0, 0  ;;  %1062 = vmatprep.subr.bf16.mxu1 %v1120_v1  ;;  %s883_s12 = sshll.u32 %s1567_s7, 3  ;;  %v1122_v4 = vld [vmem:[%s1557_s3 + $0x28] sm:$0xff]   ;;  %vm259_vm1 = vcmask 64512   ;;  %v1123_v15 = vld [vmem:[%s1557_s3 + $0x20] sm:$0xff]   ;;  %v1124_v19 = vld [vmem:[%s1557_s3 + $0x18] sm:$0xff]   ;;  %s1507_s7 = scalar_lea.hbm %s1559_s5, %s939_s25 }
  0x15   : > { %1013 = vmatpush3.bf16.msra.mxu0 %v286_v2  ;;  %1070 = vmatpush3.bf16.msra.mxu1 %v1120_v1  ;;  %s1351_s17 = scalar_lea.vmem %s1554_s0, %s883_s12  ;;  %v1125_v31 = vld [vmem:[%s1557_s3 + $0x10] sm:$0xff]   ;;  %v1126_v32 = vld [vmem:[%s1557_s3 + $0x8] sm:$0xff]   ;;  %v1127_v33 = vld [vmem:[%s1557_s3] sm:$0xff]  }
  0x16   : > { %1030 = vmatprep.subr.bf16.mxu0 %v1120_v1  ;;  %1063 = vmatprep.subr.bf16.mxu1 %v1121_v3  ;;  %v227_v5 = vld [vmem:[%s1351_s17] sm:$0xff]  ;;  %v228_v6 = vld [vmem:[%s1351_s17 + $0x8] sm:$0xff]  ;;  %v229_v7 = vld [vmem:[%s1351_s17 + $0x10] sm:$0xff] }
  0x17   : > { %v243_v8 = vpack.c.bf16 %v228_v6, %v227_v5  ;;  %v230_v9 = vld [vmem:[%s1351_s17 + $0x18] sm:$0xff]  ;;  %v231_v10 = vld [vmem:[%s1351_s17 + $0x20] sm:$0xff]  ;;  %v232_v11 = vld [vmem:[%s1351_s17 + $0x28] sm:$0xff] }
  0x18   : > { %v244_v12 = vpack.c.bf16 %v230_v9, %v229_v7  ;;  %v245_v13 = vpack.c.bf16 %v232_v11, %v231_v10  ;;  %v233_v14 = vld [vmem:[%s1351_s17 + $0x30] sm:$0xff]  ;;  %v234_v16 = vld [vmem:[%s1351_s17 + $0x38] sm:$0xff]  ;;  %v235_v17 = vld [vmem:[%s1351_s17 + $0x40] sm:$0xff] }
  0x19   : > { %1071 = vmatpush3.bf16.msra.mxu1 %v1121_v3  ;;  %1014 = vmatprep.mubr.msk.bf16.mxu0 %vm259_vm1, %v243_v8  ;;  %v236_v18 = vld [vmem:[%s1351_s17 + $0x48] sm:$0xff]  ;;  %v246_v20 = vpack.c.bf16 %v234_v16, %v233_v14  ;;  %v237_v22 = vld [vmem:[%s1351_s17 + $0x50] sm:$0xff]  ;;  %v238_v23 = vld [vmem:[%s1351_s17 + $0x58] sm:$0xff] }
  0x1a   : > { %1064 = vmatprep.subr.bf16.mxu1 %v1122_v4  ;;  %1015 = vmatmul.mubr.msk.bf16.vlgmr.msra.gmra.mxu0 %vm259_vm1, %v244_v12  ;;  %v247_v21 = vpack.c.bf16 %v236_v18, %v235_v17  ;;  %v239_v24 = vld [vmem:[%s1351_s17 + $0x60] sm:$0xff]  ;;  %v240_v25 = vld [vmem:[%s1351_s17 + $0x68] sm:$0xff]  ;;  %v248_v26 = vpack.c.bf16 %v238_v23, %v237_v22  ;;  %v241_v28 = vld [vmem:[%s1351_s17 + $0x70] sm:$0xff] }
  0x1b   : > { %1018 = vmatprep.mubr.msk.bf16.mxu0 %vm259_vm1, %v245_v13  ;;  %1031 = vmatpush3.bf16.msra.mxu0 %v1120_v1  ;;  %v249_v27 = vpack.c.bf16 %v240_v25, %v239_v24  ;;  %v242_v29 = vld [vmem:[%s1351_s17 + $0x78] sm:$0xff]  ;;  %v884_v36 = vld [vmem:[%s1556_s2] ss:$0 sm:$0xff]  ;;  %s881_s17 = sshll.u32 %s216_s16, 6 }
  0x1c   : > { %1032 = vmatprep.subr.bf16.mxu0 %v1121_v3  ;;  %v250_v30 = vpack.c.bf16 %v242_v29, %v241_v28  ;;  %s1479_s23 = scalar_lea.vmem [#allocation2], %s881_s17 }
  0x1d   : > { %1072 = vmatpush3.bf16.msra.mxu1 %v1122_v4  ;;  %s815_s26 = sshll.u32 %s1479_s23, 4  ;;  %s1509_s26 = int_to_ptr.vmem [resolvable:$true] %s815_s26 }
  0x1e   : > { %1065 = vmatprep.subr.bf16.mxu1 %v1123_v15  ;;  %s1192_s8 = scalar_lea.vmem %s1509_s26, 1024  ;;  %p1199_p0 = scmp.lt.s32.totalorder %s1509_s26, %s1197_s10 }
  0x1f   : > { %1033 = vmatpush3.bf16.msra.mxu0 %v1121_v3  ;;  %p1193_p11 = scmp.ne.s32.totalorder %s1509_s26, %s1192_s8  ;;  %p1200_p1 = scmp.lt.s32.totalorder %s1198_s11, %s1192_s8 }
  0x20   : > { %1034 = vmatprep.subr.bf16.mxu0 %v1122_v4 }
  0x21   : > { %1073 = vmatpush3.bf16.msra.mxu1 %v1123_v15  ;;  %p1194_p12 = pnand %p1193_p11, %p1325_p5  ;;  %p1201_p2 = por %p1200_p1, %p1199_p0 }
  0x22   : > { %1066 = vmatprep.subr.bf16.mxu1 %v1124_v19  ;;  %1019 = vmatmul.mubr.msk.bf16.gmra.mxu0 %vm259_vm1, %v246_v20 }
  0x23   : > { %1022 = vmatprep.mubr.msk.bf16.mxu0 %vm259_vm1, %v247_v21  ;;  %1035 = vmatpush3.bf16.msra.mxu0 %v1122_v4  ;;  %p1195_p13 = pneg %p1194_p12 }
  0x24   : > { %1036 = vmatprep.subr.bf16.mxu0 %v1123_v15 }
  0x25   : > { %1074 = vmatpush3.bf16.msra.mxu1 %v1124_v19  ;;  %p1202_p3 = pnand %p1201_p2, %p1195_p13 }
  0x26   : > { %1067 = vmatprep.subr.bf16.mxu1 %v1125_v31 }
  0x27   : > { %1037 = vmatpush3.bf16.msra.mxu0 %v1123_v15 }
  0x28   : > { %1038 = vmatprep.subr.bf16.mxu0 %v1124_v19 }
  0x29   : > { %1075 = vmatpush3.bf16.msra.mxu1 %v1125_v31 }
  0x2a   : > { %1023 = vmatmul.mubr.msk.bf16.gmra.mxu0 %vm259_vm1, %v248_v26  ;;  %1068 = vmatprep.subr.bf16.mxu1 %v1126_v32 }
  0x2b   : > { %1026 = vmatprep.mubr.msk.bf16.mxu0 %vm259_vm1, %v249_v27  ;;  %1039 = vmatpush3.bf16.msra.mxu0 %v1124_v19  ;;  %v893_v27 = vld [vmem:[%s1558_s4] ss:$0 sm:$0xff] }
  0x2c   : > { %1040 = vmatprep.subr.bf16.mxu0 %v1125_v31 }
  0x2d   : > { %1076 = vmatpush3.bf16.msra.mxu1 %v1126_v32 }
  0x2e   : > { %1069 = vmatprep.subr.bf16.mxu1 %v1127_v33 }
  0x2f   : > { %1041 = vmatpush3.bf16.msra.mxu0 %v1125_v31 }
  0x30   : > { %1042 = vmatprep.subr.bf16.mxu0 %v1126_v32 }
  0x31   : > { %1077 = vmatpush3.bf16.msra.mxu1 %v1127_v33 }
  0x32   : > { %1027 = vmatmul.mubr.msk.bf16.gmra.mxu0 %vm259_vm1, %v250_v30 }
  0x33   : > { %1043 = vmatpush3.bf16.msra.mxu0 %v1126_v32 }
  0x34   : > { %1044 = vmatprep.subr.bf16.mxu0 %v1127_v33 }
  0x37   : > { %1045 = vmatpush3.bf16.msra.mxu0 %v1127_v33 }
  0xda   : > { %v1016_v34 = vpop.f32.mrf.mxu0 }
  0xdb   : > { %v331_v40 = vadd.f32 %v1016_v34, %v884_v36 }
  0xdc   : > { %v322_v35 = vpop.f32.mrf.mxu0 }
  0xdd   : > { %v323_v38 = vadd.f32 %v884_v36, %v322_v35  ;;  %v387_v47 = vmax.f32 %v331_v40, 0.0 }
  0xde   : > { %v1017_v37 = vpop.f32.mrf.mxu0 }
  0xdf   : > { %v334_v39 = vadd.f32 %v1017_v37, %v884_v36  ;;  %v385_v45 = vmax.f32 %v323_v38, 0.0 }
  0xe0   : > { %v325_v41 = vpop.f32.mrf.mxu0 }
  0xe1   : > { %v326_v42 = vadd.f32 %v884_v36, %v325_v41  ;;  %v388_v43 = vmax.f32 %v334_v39, 0.0 }
  0xe2   : > { %v1020_v44 = vpop.f32.mrf.mxu0 }
  0xe3   : > { %v386_v46 = vmax.f32 %v326_v42, 0.0  ;;  %v402_v50 = vpack.c.bf16 %v388_v43, %v387_v47  ;;  %v347_v54 = vadd.f32 %v1020_v44, %v884_v36 }
  0xe4   : > { %v338_v48 = vpop.f32.mrf.mxu0 }
  0xe5   : > { %v401_v49 = vpack.c.bf16 %v386_v46, %v385_v45  ;;  %v339_v52 = vadd.f32 %v884_v36, %v338_v48  ;;  %v391_v61 = vmax.f32 %v347_v54, 0.0 }
  0xe6   : > { %v1021_v51 = vpop.f32.mrf.mxu0 }
  0xe7   : > { %v350_v53 = vadd.f32 %v1021_v51, %v884_v36  ;;  %1046 = vmatprep.mubr.bf16.mxu0 %v401_v49  ;;  %v389_v59 = vmax.f32 %v339_v52, 0.0 }
  0xe8   : > { %v341_v55 = vpop.f32.mrf.mxu0  ;;  %1047 = vmatmul.mubr.bf16.vlgmr.msra.gmra.mxu0 %v402_v50 }
  0xe9   : > { %v342_v56 = vadd.f32 %v884_v36, %v341_v55  ;;  %v392_v57 = vmax.f32 %v350_v53, 0.0 }
  0xea   : > { %v1024_v58 = vpop.f32.mrf.mxu0 }
  0xeb   : > { %v390_v60 = vmax.f32 %v342_v56, 0.0  ;;  %v404_v0 = vpack.c.bf16 %v392_v57, %v391_v61  ;;  %v363_v4 = vadd.f32 %v1024_v58, %v884_v36 }
  0xec   : > { %v354_v62 = vpop.f32.mrf.mxu0 }
  0xed   : > { %v403_v63 = vpack.c.bf16 %v390_v60, %v389_v59  ;;  %v355_v2 = vadd.f32 %v884_v36, %v354_v62  ;;  %v395_v11 = vmax.f32 %v363_v4, 0.0 }
  0xee   : > { %v1025_v1 = vpop.f32.mrf.mxu0 }
  0xef   : > { %v366_v3 = vadd.f32 %v1025_v1, %v884_v36  ;;  %1050 = vmatprep.mubr.bf16.mxu1 %v403_v63  ;;  %v393_v9 = vmax.f32 %v355_v2, 0.0 }
  0xf0   : > { %v357_v5 = vpop.f32.mrf.mxu0  ;;  %1051 = vmatmul.mubr.bf16.vlgmr.msra.gmra.mxu1 %v404_v0 }
  0xf1   : > { %v358_v6 = vadd.f32 %v884_v36, %v357_v5  ;;  %v396_v7 = vmax.f32 %v366_v3, 0.0 }
  0xf2   : > { %v1028_v8 = vpop.f32.mrf.mxu0 }
  0xf3   : > { %v394_v10 = vmax.f32 %v358_v6, 0.0  ;;  %v406_v14 = vpack.c.bf16 %v396_v7, %v395_v11  ;;  %v379_v18 = vadd.f32 %v1028_v8, %v884_v36 }
  0xf4   : > { %v370_v12 = vpop.f32.mrf.mxu0 }
  0xf5   : > { %v405_v13 = vpack.c.bf16 %v394_v10, %v393_v9  ;;  %v371_v16 = vadd.f32 %v884_v36, %v370_v12  ;;  %v399_v24 = vmax.f32 %v379_v18, 0.0 }
  0xf6   : > { %v1029_v15 = vpop.f32.mrf.mxu0 }
  0xf7   : > { %v382_v17 = vadd.f32 %v1029_v15, %v884_v36  ;;  %1054 = vmatprep.mubr.bf16.mxu1 %v405_v13  ;;  %v397_v22 = vmax.f32 %v371_v16, 0.0 }
  0xf8   : > { %v373_v19 = vpop.f32.mrf.mxu0  ;;  %1055 = vmatmul.mubr.bf16.gmra.mxu1 %v406_v14 }
  0xf9   : > { %v374_v20 = vadd.f32 %v884_v36, %v373_v19  ;;  %v400_v21 = vmax.f32 %v382_v17, 0.0 }
  0xfb   : > { %v398_v23 = vmax.f32 %v374_v20, 0.0  ;;  %v408_v26 = vpack.c.bf16 %v400_v21, %v399_v24 }
  0xfd   : > { %v407_v25 = vpack.c.bf16 %v398_v23, %v397_v22 }
  0xff   : > { %1058 = vmatprep.mubr.bf16.mxu1 %v407_v25 }
 0x100   : > { %1059 = vmatmul.mubr.bf16.gmra.mxu1 %v408_v26 }
 0x1a8   : > { %v1048_v28 = vpop.f32.mrf.mxu0 }
 0x1a9   : > { %v523_v29 = vadd.f32 %v1048_v28, %v893_v27 }
 0x1aa   : > { %v514_v30 = vpop.f32.mrf.mxu0 }
 0x1ab   : > { %v515_v31 = vadd.f32 %v893_v27, %v514_v30  ;;  %581 = vmax.xlane.f32.xlu1 %v523_v29 }
 0x1ac   : > { %v1049_v32 = vpop.f32.mrf.mxu0 }
 0x1ad   : > { %v526_v33 = vadd.f32 %v1049_v32, %v893_v27  ;;  %577 = vmax.xlane.f32.xlu0 %v515_v31 }
 0x1ae   : > { %v517_v34 = vpop.f32.mrf.mxu0 }
 0x1af   : > { %v518_v35 = vadd.f32 %v893_v27, %v517_v34  ;;  %583 = vmax.xlane.f32.xlu1 %v526_v33 }
 0x1b0   : > { %v1052_v36 = vpop.f32.mrf.mxu1 }
 0x1b1   : > { %579 = vmax.xlane.f32.xlu0 %v518_v35  ;;  %v539_v38 = vadd.f32 %v1052_v36, %v893_v27 }
 0x1b2   : > { %v530_v37 = vpop.f32.mrf.mxu1 }
 0x1b3   : > { %v531_v42 = vadd.f32 %v893_v27, %v530_v37 }
 0x1b4   : > { %v1053_v39 = vpop.f32.mrf.mxu1 }
 0x1b5   : > { %v542_v40 = vadd.f32 %v1053_v39, %v893_v27  ;;  %589 = vmax.xlane.f32.xlu0 %v539_v38 }
 0x1b6   : > { %v533_v41 = vpop.f32.mrf.mxu1 }
 0x1b7   : > { %591 = vmax.xlane.f32.xlu1 %v542_v40  ;;  %v534_v44 = vadd.f32 %v893_v27, %v533_v41 }
 0x1b8   : > { %v1056_v43 = vpop.f32.mrf.mxu1 }
 0x1b9   : > { %585 = vmax.xlane.f32.xlu0 %v531_v42  ;;  %v555_v46 = vadd.f32 %v1056_v43, %v893_v27 }
 0x1ba   : > { %v546_v45 = vpop.f32.mrf.mxu1 }
 0x1bb   : > { %587 = vmax.xlane.f32.xlu1 %v534_v44  ;;  %v1400_v50 = vadd.f32 %v893_v27, %v546_v45 }
 0x1bc   : > { %v1057_v47 = vpop.f32.mrf.mxu1 }
 0x1bd   : > { %v1398_v48 = vadd.f32 %v1057_v47, %v893_v27  ;;  %597 = vmax.xlane.f32.xlu0 %v555_v46 }
 0x1be   : > { %v549_v49 = vpop.f32.mrf.mxu1 }
 0x1bf   : > { %599 = vmax.xlane.f32.xlu1 %v1398_v48  ;;  %v1403_v52 = vadd.f32 %v893_v27, %v549_v49 }
 0x1c0   : > { %v1060_v51 = vpop.f32.mrf.mxu1 }
 0x1c1   : > { %593 = vmax.xlane.f32.xlu0 %v1400_v50  ;;  %v1410_v57 = vadd.f32 %v1060_v51, %v893_v27 }
 0x1c2   : > { %v562_v53 = vpop.f32.mrf.mxu1 }
 0x1c3   : > { %v1406_v54 = vadd.f32 %v893_v27, %v562_v53  ;;  %595 = vmax.xlane.f32.xlu1 %v1403_v52 }
 0x1c4   : > { %v1061_v55 = vpop.f32.mrf.mxu1 }
 0x1c5   : > { %601 = vmax.xlane.f32.xlu0 %v1406_v54  ;;  %v1416_v59 = vadd.f32 %v1061_v55, %v893_v27 }
 0x1c6   : > { %v565_v56 = vpop.f32.mrf.mxu1 }
 0x1c7   : > { %v1412_v58 = vadd.f32 %v893_v27, %v565_v56 }
 0x1c9   : > { %603 = vmax.xlane.f32.xlu1 %v1412_v58  ;;  %605 = vmax.xlane.f32.xlu0 %v1410_v57 }
 0x1cd   : > { %607 = vmax.xlane.f32.xlu1 %v1416_v59 }
 0x234   : > { %v582_v60 = vpop.xlane.xlu1 %581 }
 0x235   : > { %v611_v61 = vsub.f32 %v523_v29, %v582_v60 }
 0x236   : > { %v578_v62 = vpop.xlane.xlu0 %577 }
 0x237   : > { %v629_v63 = vmul.f32 1.442695, %v611_v61  ;;  %v609_v0 = vsub.f32 %v515_v31, %v578_v62 }
 0x238   : > { %v584_v1 = vpop.xlane.xlu1 %583 }
 0x239   : > { %1128 = vpow2.f32 %v629_v63  ;;  %v625_v2 = vmul.f32 1.442695, %v609_v0  ;;  %v612_v3 = vsub.f32 %v526_v33, %v584_v1 }
 0x23a   : > { %v580_v4 = vpop.xlane.xlu0 %579 }
 0x23b   : > { %v631_v5 = vmul.f32 1.442695, %v612_v3  ;;  %v610_v6 = vsub.f32 %v518_v35, %v580_v4  ;;  %1130 = vpow2.f32 %v625_v2 }
 0x23d   : > { %1132 = vpow2.f32 %v631_v5  ;;  %v627_v7 = vmul.f32 1.442695, %v610_v6 }
 0x23e   : > { %v590_v8 = vpop.xlane.xlu0 %589 }
 0x23f   : > { %v615_v9 = vsub.f32 %v539_v38, %v590_v8  ;;  %1134 = vpow2.f32 %v627_v7 }
 0x240   : > { %v592_v10 = vpop.xlane.xlu1 %591 }
 0x241   : > { %v637_v11 = vmul.f32 1.442695, %v615_v9  ;;  %v616_v12 = vsub.f32 %v542_v40, %v592_v10 }
 0x242   : > { %v586_v13 = vpop.xlane.xlu0 %585 }
 0x243   : > { %1136 = vpow2.f32 %v637_v11  ;;  %v639_v14 = vmul.f32 1.442695, %v616_v12  ;;  %v613_v15 = vsub.f32 %v531_v42, %v586_v13 }
 0x244   : > { %v588_v16 = vpop.xlane.xlu1 %587 }
 0x245   : > { %1138 = vpow2.f32 %v639_v14  ;;  %v633_v17 = vmul.f32 1.442695, %v613_v15  ;;  %v614_v18 = vsub.f32 %v534_v44, %v588_v16 }
 0x246   : > { %v1419_v19 = vpop.eup %1128  ;;  %v598_v20 = vpop.xlane.xlu0 %597 }
 0x247   : > { %1140 = vpow2.f32 %v633_v17  ;;  %v635_v21 = vmul.f32 1.442695, %v614_v18  ;;  %v619_v22 = vsub.f32 %v555_v46, %v598_v20  ;;  %661 = vadd.xlane.f32.xlu0 %v1419_v19 }
 0x248   : > { %v600_v23 = vpop.xlane.xlu1 %599  ;;  %v1422_v24 = vpop.eup %1130 }
 0x249   : > { %1142 = vpow2.f32 %v635_v21  ;;  %v645_v25 = vmul.f32 1.442695, %v619_v22  ;;  %v620_v26 = vsub.f32 %v1398_v48, %v600_v23 }
 0x24a   : > { %v1425_v27 = vpop.eup %1132  ;;  %v594_v28 = vpop.xlane.xlu0 %593 }
 0x24b   : > { %1144 = vpow2.f32 %v645_v25  ;;  %v647_v29 = vmul.f32 1.442695, %v620_v26  ;;  %v617_v30 = vsub.f32 %v1400_v50, %v594_v28  ;;  %663 = vadd.xlane.f32.xlu1 %v1425_v27  ;;  %657 = vadd.xlane.f32.xlu0 %v1422_v24 }
 0x24c   : > { %v596_v31 = vpop.xlane.xlu1 %595  ;;  %v1431_v34 = vpop.eup %1134 }
 0x24d   : > { %1146 = vpow2.f32 %v647_v29  ;;  %v641_v32 = vmul.f32 1.442695, %v617_v30  ;;  %v618_v33 = vsub.f32 %v1403_v52, %v596_v31 }
 0x24e   : > { %v602_v35 = vpop.xlane.xlu0 %601 }
 0x24f   : > { %1148 = vpow2.f32 %v641_v32  ;;  %v643_v36 = vmul.f32 1.442695, %v618_v33  ;;  %v621_v37 = vsub.f32 %v1406_v54, %v602_v35  ;;  %659 = vadd.xlane.f32.xlu1 %v1431_v34 }
 0x250   : > { %v1435_v38 = vpop.eup %1136 }
 0x251   : > { %1150 = vpow2.f32 %v643_v36  ;;  %v649_v39 = vmul.f32 1.442695, %v621_v37  ;;  %669 = vadd.xlane.f32.xlu0 %v1435_v38 }
 0x252   : > { %v1438_v40 = vpop.eup %1138  ;;  %v604_v41 = vpop.xlane.xlu1 %603 }
 0x253   : > { %v606_v42 = vpop.xlane.xlu0 %605  ;;  %1152 = vpow2.f32 %v649_v39  ;;  %v622_v43 = vsub.f32 %v1412_v58, %v604_v41  ;;  %671 = vadd.xlane.f32.xlu1 %v1438_v40 }
 0x254   : > { %v623_v44 = vsub.f32 %v1410_v57, %v606_v42  ;;  %v1443_v45 = vpop.eup %1140 }
 0x255   : > { %v651_v46 = vmul.f32 1.442695, %v622_v43  ;;  %665 = vadd.xlane.f32.xlu0 %v1443_v45 }
 0x256   : > { %v653_v47 = vmul.f32 1.442695, %v623_v44  ;;  %v1446_v48 = vpop.eup %1142  ;;  %v608_v49 = vpop.xlane.xlu1 %607 }
 0x257   : > { %1154 = vpow2.f32 %v651_v46  ;;  %v624_v50 = vsub.f32 %v1416_v59, %v608_v49  ;;  %667 = vadd.xlane.f32.xlu1 %v1446_v48 }
 0x258   : > { %v1450_v51 = vpop.eup %1144  ;;  %1156 = vpow2.f32 %v653_v47 }
 0x259   : > { %v655_v52 = vmul.f32 1.442695, %v624_v50  ;;  %677 = vadd.xlane.f32.xlu0 %v1450_v51 }
 0x25a   : > { %v1453_v53 = vpop.eup %1146 }
 0x25b   : > { %1158 = vpow2.f32 %v655_v52  ;;  %679 = vadd.xlane.f32.xlu1 %v1453_v53 }
 0x25c   : > { %v1456_v54 = vpop.eup %1148 }
 0x25d   : > { %673 = vadd.xlane.f32.xlu0 %v1456_v54 }
 0x25e   : > { %v1459_v55 = vpop.eup %1150 }
 0x25f   : > { %675 = vadd.xlane.f32.xlu1 %v1459_v55 }
 0x260   : > { %v1462_v56 = vpop.eup %1152 }
 0x261   : > { %681 = vadd.xlane.f32.xlu0 %v1462_v56 }
 0x264   : > { %v1465_v57 = vpop.eup %1154 }
 0x265   : > { %v1467_v58 = vpop.eup %1156  ;;  %683 = vadd.xlane.f32.xlu1 %v1465_v57 }
 0x266   : > { %685 = vadd.xlane.f32.xlu0 %v1467_v58 }
 0x268   : > { %v1471_v59 = vpop.eup %1158 }
 0x269   : > { %687 = vadd.xlane.f32.xlu1 %v1471_v59 }
 0x2d0   : > { %v662_v60 = vpop.xlane.xlu0 %661 }
 0x2d1   : > { %1160 = vrcp.f32 %v662_v60 }
 0x2d4   : > { %v664_v61 = vpop.xlane.xlu1 %663  ;;  %v658_v62 = vpop.xlane.xlu0 %657 }
 0x2d5   : > { %1162 = vrcp.f32 %v664_v61 }
 0x2d6   : > { %1164 = vrcp.f32 %v658_v62 }
 0x2d8   : > { %v660_v63 = vpop.xlane.xlu1 %659 }
 0x2d9   : > { %1166 = vrcp.f32 %v660_v63 }
 0x2da   : > { %v670_v0 = vpop.xlane.xlu0 %669 }
 0x2db   : > { %1168 = vrcp.f32 %v670_v0 }
 0x2dc   : > { %v672_v1 = vpop.xlane.xlu1 %671 }
 0x2dd   : > { %1170 = vrcp.f32 %v672_v1 }
 0x2de   : > { %v666_v2 = vpop.xlane.xlu0 %665  ;;  %v1161_v3 = vpop.eup %1160 }
 0x2df   : > { %1172 = vrcp.f32 %v666_v2  ;;  %v694_v7 = vmul.f32 %v1161_v3, %v1419_v19 }
 0x2e0   : > { %v668_v4 = vpop.xlane.xlu1 %667 }
 0x2e1   : > { %1174 = vrcp.f32 %v668_v4 }
 0x2e2   : > { %v1163_v5 = vpop.eup %1162  ;;  %v678_v6 = vpop.xlane.xlu0 %677 }
 0x2e3   : > { %v696_v8 = vmul.f32 %v1163_v5, %v1425_v27  ;;  %1176 = vrcp.f32 %v678_v6  ;;  %v1165_v9 = vpop.eup %1164 }
 0x2e4   : > { %v680_v10 = vpop.xlane.xlu1 %679  ;;  %v690_v14 = vmul.f32 %v1165_v9, %v1422_v24 }
 0x2e5   : > { %v948_v11 = vpack.c.bf16 %v696_v8, %v694_v7  ;;  %1178 = vrcp.f32 %v680_v10 }
 0x2e6   : > { %v1167_v12 = vpop.eup %1166  ;;  %v674_v13 = vpop.xlane.xlu0 %673 }
 0x2e7   : > { %980 = vst [vmem:[%s1479_s23 + $0x8] sm:$0xff] %v948_v11   ;;  %v692_v15 = vmul.f32 %v1167_v12, %v1431_v34  ;;  %1180 = vrcp.f32 %v674_v13 }
 0x2e8   : > { %v1169_v16 = vpop.eup %1168  ;;  %v676_v17 = vpop.xlane.xlu1 %675 }
 0x2e9   : > { %v943_v18 = vpack.c.bf16 %v692_v15, %v690_v14  ;;  %1182 = vrcp.f32 %v676_v17  ;;  %v702_v21 = vmul.f32 %v1169_v16, %v1435_v38 }
 0x2ea   : > { %v1171_v19 = vpop.eup %1170  ;;  %v682_v20 = vpop.xlane.xlu0 %681 }
 0x2eb   : > { %944 = vst [vmem:[%s1479_s23] sm:$0xff] %v943_v18   ;;  %v704_v22 = vmul.f32 %v1171_v19, %v1438_v40  ;;  %1184 = vrcp.f32 %v682_v20 }
 0x2ec   : > { %v1173_v23 = vpop.eup %1172 }
 0x2ed   : > { %v958_v25 = vpack.c.bf16 %v704_v22, %v702_v21  ;;  %v698_v27 = vmul.f32 %v1173_v23, %v1443_v45 }
 0x2ee   : > { %v1175_v24 = vpop.eup %1174  ;;  %v684_v26 = vpop.xlane.xlu1 %683 }
 0x2ef   : > { %982 = vst [vmem:[%s1479_s23 + $0x18] sm:$0xff] %v958_v25   ;;  %v700_v28 = vmul.f32 %v1175_v24, %v1446_v48  ;;  %1186 = vrcp.f32 %v684_v26  ;;  %v686_v29 = vpop.xlane.xlu0 %685 }
 0x2f0   : > { %v1177_v30 = vpop.eup %1176  ;;  %1188 = vrcp.f32 %v686_v29 }
 0x2f1   : > { %v953_v31 = vpack.c.bf16 %v700_v28, %v698_v27  ;;  %v710_v34 = vmul.f32 %v1177_v30, %v1450_v51 }
 0x2f2   : > { %v1179_v32 = vpop.eup %1178  ;;  %v688_v33 = vpop.xlane.xlu1 %687 }
 0x2f3   : > { %981 = vst [vmem:[%s1479_s23 + $0x10] sm:$0xff] %v953_v31   ;;  %v712_v35 = vmul.f32 %v1179_v32, %v1453_v53  ;;  %1190 = vrcp.f32 %v688_v33 }
 0x2f4   : > { %v1181_v36 = vpop.eup %1180 }
 0x2f5   : > { %v968_v37 = vpack.c.bf16 %v712_v35, %v710_v34  ;;  %v706_v39 = vmul.f32 %v1181_v36, %v1456_v54 }
 0x2f6   : > { %v1183_v38 = vpop.eup %1182 }
 0x2f7   : > { %984 = vst [vmem:[%s1479_s23 + $0x28] sm:$0xff] %v968_v37   ;;  %v708_v40 = vmul.f32 %v1183_v38, %v1459_v55 }
 0x2f8   : > { %v1185_v42 = vpop.eup %1184 }
 0x2f9   : > { %v963_v41 = vpack.c.bf16 %v708_v40, %v706_v39  ;;  %v714_v44 = vmul.f32 %v1185_v42, %v1462_v56 }
 0x2fb   : > { %983 = vst [vmem:[%s1479_s23 + $0x20] sm:$0xff] %v963_v41  }
 0x2fc   : > { %v1187_v43 = vpop.eup %1186 }
 0x2fd   : > { %v716_v45 = vmul.f32 %v1187_v43, %v1465_v57  ;;  %v1189_v46 = vpop.eup %1188 }
 0x2fe   : > { %v718_v49 = vmul.f32 %v1189_v46, %v1467_v58 }
 0x2ff   : > { %v973_v47 = vpack.c.bf16 %v716_v45, %v714_v44 }
 0x300   : > { %v1191_v48 = vpop.eup %1190 }
 0x301   : > { %985 = vst [vmem:[%s1479_s23 + $0x30] sm:$0xff] %v973_v47   ;;  %v720_v50 = vmul.f32 %v1191_v48, %v1471_v59 }
 0x303   : > { %v978_v51 = vpack.c.bf16 %v720_v50, %v718_v49 }
 0x305   : > { %986 = vst [vmem:[%s1479_s23 + $0x38] sm:$0xff] %v978_v51  }
 0x306   : > { %1205 = shalt.err (!%p1202_p3)
}
 0x307   : > { %s1206_s12 = scalar_lea.hbm %s1507_s7, 1024  ;;  %s1210_s15 = scalar_lea.hbm %s1559_s5, 2048 }
 0x308   : > { %p1207_p4 = scmp.ne.s32.totalorder %s1507_s7, %s1206_s12  ;;  %p1211_p9 = scmp.lt.s32.totalorder %s1507_s7, %s1559_s5 }
 0x309   : > { %p1212_p10 = scmp.lt.s32.totalorder %s1210_s15, %s1206_s12 }
 0x30a   : > { %p1208_p7 = pnand %p1207_p4, %p1325_p5 }
 0x30b   : > { %p1213_p11 = por %p1212_p10, %p1211_p9 }
 0x30c   : > { %p1209_p8 = pneg %p1208_p7 }
 0x30e   : > { %p1214_p12 = pnand %p1213_p11, %p1209_p8 }
 0x310   : > { %1217 = shalt.err (!%p1214_p12)
}
 0x311   : > { %s1255_s23 = smov 64   ;;  %s1256_s25 = smov 4  }
 0x312   : > { %1079 = dma.vmem_to_hbm [thread:$0]  (%p1325_p5), %s1509_s26, 1024, %s1507_s7, %s1514_s22, %s1255_s23, %s1255_s23, %s1256_s25  }
 0x313 PF: > { %p1085_p13 = scmp.ge.s32.totalorder %s1252_s21, 2  ;;  %s830_s30 = sand.u32 1, %s1240_s18  }
 0x314   : > { %s831_s6 = scalar_lea.sflag [#allocation3], %s830_s30 }
 0x315   : > { %p1082_p0 = pnand %p1085_p13, %p1329_p6 }
 0x317   : > { %p1083_p1 = pneg %p1082_p0 }
 0x319   : > { %1235 = dma.done.wait (%p1083_p1), %s831_s6, 1024  }
 0x31a   : > { %1237 = vsyncadd (%p1083_p1), %s831_s6, 4294966272  ;;  %p15_p2 = scmp.ge.s32.totalorder %s1312_s24, 4   ;;  %s1562_s18 = smov %s1244_s19 }
 0x31b   : > { %s1563_s19 = smov %s1248_s20  ;;  %s1564_s20 = smov %s1323_s27 }
 0x31c   : > { %s1565_s21 = smov %s1312_s24  ;;  %17 = sbr.rel (!%p15_p2) target bundleno = 3 (0x3), region = 75 }
 0x321   :  { %836 = vsyncpa [#allocation3], 1 }
 0x322   :  { %838 = vsyncpa [#allocation3 + $0x1], 1 }

</bundles_post_ra>
